<compile_context>
chip_gen: v5e
topology: v5e:2x2
jax: 0.10.0
libtpu: 0.0.40
codegen_flags: <defaults>
</compile_context>

<pallas_src>
import functools

import jax
import jax.numpy as jnp
import numpy as np
from jax.experimental import pallas as pl
from jax.experimental.pallas import tpu as pltpu

EPS = 1e-5  # torch.nn.InstanceNorm2d default (affine=False, biased variance)
_SUBLANE = 8


def _contour_kernel(x_ref, w_ref, b_ref, m_ref, o_ref, *, H, W):
    # x_ref: (1, C, HW)    w_ref: (C, 9*C)    b_ref: (C, 1)
    # m_ref: (9, 1, HW) boundary masks (1.0 inside / 0.0 halo), one per tap
    # o_ref: (1, C, HW)
    _, c, hw = x_ref.shape
    x = x_ref[0].astype(jnp.float32)                      # (C, HW), lane-dense

    # im2col: 9 shifted copies of x stacked along sublanes -> (9C, HW).
    taps = []
    t = 0
    for dh in (-1, 0, 1):
        for dw in (-1, 0, 1):
            off = dh * W + dw                             # flat (h*W + w) offset
            if off == 0:
                tap = x                                   # center tap: no mask
            else:
                tap = pltpu.roll(x, shift=(-off) % hw, axis=1) * m_ref[t]
            taps.append(tap)
            t += 1
    xcol = jnp.concatenate(taps, axis=0)                  # (9C, HW)

    # One MXU matmul (K = 9C) + bias.
    # (On v6e/v7x the operands could be cast to bf16 with f32 accumulation;
    #  kept f32 here so the self-check tolerance stays tight.)
    y = jnp.dot(w_ref[...], xcol, preferred_element_type=jnp.float32)
    y = y + b_ref[...]

    # InstanceNorm2d (biased variance over H*W, per channel) + ReLU.
    mean = jnp.mean(y, axis=1, keepdims=True)
    var = jnp.mean((y - mean) ** 2, axis=1, keepdims=True)
    y = (y - mean) * jax.lax.rsqrt(var + EPS)
    y = jnp.maximum(y, 0.0)

    o_ref[0] = y.astype(o_ref.dtype)


def _boundary_masks(H, W):
    """(9, 1, H*W) float32 masks: 1.0 where the shifted tap is in-bounds."""
    hw = np.arange(H * W)
    h, w = hw // W, hw % W
    masks = np.zeros((9, 1, H * W), np.float32)
    t = 0
    for dh in (-1, 0, 1):
        for dw in (-1, 0, 1):
            valid = (h + dh >= 0) & (h + dh < H) & (w + dw >= 0) & (w + dw < W)
            masks[t, 0, :] = valid
            t += 1
    return jnp.asarray(masks)


def contour(x_nchw, w_oihw, b):
    """x: (N, C, H, W); w: (C, C, 3, 3) OIHW; b: (C,). Returns (N, C, H, W)."""
    n, c, h, wd = x_nchw.shape
    hw = h * wd

    # Pad channels to a sublane multiple so im2col stacking stays tile-aligned.
    cp = ((c + _SUBLANE - 1) // _SUBLANE) * _SUBLANE
    if cp != c:
        x_nchw = jnp.pad(x_nchw, ((0, 0), (0, cp - c), (0, 0), (0, 0)))
        w_oihw = jnp.pad(w_oihw, ((0, cp - c), (0, cp - c), (0, 0), (0, 0)))
        b = jnp.pad(b, (0, cp - c))

    x = x_nchw.reshape(n, cp, hw)                          # free (contiguous) reshape
    # W_mat[co, (kh*3 + kw)*C + ci] = w[co, ci, kh, kw]
    w_mat = jnp.transpose(w_oihw, (0, 2, 3, 1)).reshape(cp, 9 * cp)
    b_col = b.reshape(cp, 1).astype(jnp.float32)
    masks = _boundary_masks(h, wd)

    kernel = functools.partial(_contour_kernel, H=h, W=wd)
    out = pl.pallas_call(
        kernel,
        out_shape=jax.ShapeDtypeStruct((n, cp, hw), x_nchw.dtype),
        grid=(n,),
        in_specs=[
            pl.BlockSpec((1, cp, hw), lambda i: (i, 0, 0)),
            pl.BlockSpec((cp, 9 * cp), lambda i: (0, 0)),
            pl.BlockSpec((cp, 1), lambda i: (0, 0)),
            pl.BlockSpec((9, 1, hw), lambda i: (0, 0, 0)),
        ],
        out_specs=pl.BlockSpec((1, cp, hw), lambda i: (i, 0, 0)),
        compiler_params=pltpu.CompilerParams(
            dimension_semantics=("parallel",)),
    )(x, w_mat, b_col, masks)

    out = out.reshape(n, cp, h, wd)
    return out[:, :c] if cp != c else out


# --------------------- Pure-JAX reference (PyTorch semantics) --------------- #

def reference(x_nchw, w_oihw, b):
    y = jax.lax.conv_general_dilated(
        x_nchw, w_oihw, window_strides=(1, 1), padding=((1, 1), (1, 1)),
        dimension_numbers=("NCHW", "OIHW", "NCHW"))
    y = y + b.reshape(1, -1, 1, 1)
    mean = jnp.mean(y, axis=(2, 3), keepdims=True)
    var = jnp.mean((y - mean) ** 2, axis=(2, 3), keepdims=True)
    y = (y - mean) / jnp.sqrt(var + EPS)
    return jnp.maximum(y, 0.0)


# --------------------------------- Main ------------------------------------ #

if __name__ == "__main__":
    ch_in = 8          # Contour(ch_in): conv maps ch_in -> ch_in
    N, H, W = 2, 16, 16

    key = jax.random.PRNGKey(0)
    kx, kw, kb = jax.random.split(key, 3)
    x = jax.random.normal(kx, (N, ch_in, H, W), jnp.float32)     # NCHW like PyTorch
    w = jax.random.normal(kw, (ch_in, ch_in, 3, 3), jnp.float32) * 0.2
    b = jax.random.normal(kb, (ch_in,), jnp.float32) * 0.1

    fwd = jax.jit(contour)
    out = jax.block_until_ready(fwd(x, w, b))

    ref = jax.block_until_ready(reference(x, w, b))
    np.testing.assert_allclose(np.asarray(out), np.asarray(ref),
                               rtol=1e-4, atol=1e-4)
    assert out.shape == (N, ch_in, H, W)
    print("KERNEL_OK")
</pallas_src>

<mosaic_0001>
module attributes {stable_mosaic.version = 11 : i64} {
  func.func @_contour_kernel(%arg0: i32, %arg1: memref<1x8x256xf32, #tpu.memory_space<vmem>>, %arg2: memref<8x72xf32, #tpu.memory_space<vmem>>, %arg3: memref<8x1xf32, #tpu.memory_space<vmem>>, %arg4: memref<9x1x256xf32, #tpu.memory_space<vmem>>, %arg5: memref<1x8x256xf32, #tpu.memory_space<vmem>>) attributes {dimension_semantics = [#tpu.dimension_semantics<parallel>], iteration_bounds = array<i64: 2>, scalar_prefetch = 0 : i64, scratch_operands = 0 : i64, tpu.core_type = #tpu.core_type<tc>, window_params = [{transform_indices = @transform_0, window_bounds = array<i64: 1, 8, 256>}, {pipeline_mode = #tpu.pipeline_mode<synchronous>, transform_indices = @transform_1, window_bounds = array<i64: 8, 72>}, {pipeline_mode = #tpu.pipeline_mode<synchronous>, transform_indices = @transform_2, window_bounds = array<i64: 8, 1>}, {pipeline_mode = #tpu.pipeline_mode<synchronous>, transform_indices = @transform_3, window_bounds = array<i64: 9, 1, 256>}, {transform_indices = @transform_4, window_bounds = array<i64: 1, 8, 256>}]} {
    %c0 = arith.constant 0 : index
    %c0_0 = arith.constant 0 : index
    %c0_1 = arith.constant 0 : index
    %0 = vector.load %arg1[%c0, %c0_0, %c0_1] : memref<1x8x256xf32, #tpu.memory_space<vmem>>, vector<1x8x256xf32>
    %1 = vector.shape_cast %0 : vector<1x8x256xf32> to vector<8x256xf32>
    %c17_i32 = arith.constant 17 : i32
    %2 = tpu.dynamic_rotate %1 by %c17_i32 dim 1 : vector<8x256xf32>, i32 -> vector<8x256xf32>
    %c0_2 = arith.constant 0 : index
    %c0_3 = arith.constant 0 : index
    %c0_4 = arith.constant 0 : index
    %3 = vector.load %arg4[%c0_2, %c0_3, %c0_4] : memref<9x1x256xf32, #tpu.memory_space<vmem>>, vector<1x1x256xf32>
    %4 = vector.shape_cast %3 : vector<1x1x256xf32> to vector<1x256xf32>
    %5 = vector.broadcast %4 : vector<1x256xf32> to vector<8x256xf32>
    %6 = arith.mulf %2, %5 : vector<8x256xf32>
    %c16_i32 = arith.constant 16 : i32
    %7 = tpu.dynamic_rotate %1 by %c16_i32 dim 1 : vector<8x256xf32>, i32 -> vector<8x256xf32>
    %c1 = arith.constant 1 : index
    %c0_5 = arith.constant 0 : index
    %c0_6 = arith.constant 0 : index
    %8 = vector.load %arg4[%c1, %c0_5, %c0_6] : memref<9x1x256xf32, #tpu.memory_space<vmem>>, vector<1x1x256xf32>
    %9 = vector.shape_cast %8 : vector<1x1x256xf32> to vector<1x256xf32>
    %10 = vector.broadcast %9 : vector<1x256xf32> to vector<8x256xf32>
    %11 = arith.mulf %7, %10 : vector<8x256xf32>
    %c15_i32 = arith.constant 15 : i32
    %12 = tpu.dynamic_rotate %1 by %c15_i32 dim 1 : vector<8x256xf32>, i32 -> vector<8x256xf32>
    %c2 = arith.constant 2 : index
    %c0_7 = arith.constant 0 : index
    %c0_8 = arith.constant 0 : index
    %13 = vector.load %arg4[%c2, %c0_7, %c0_8] : memref<9x1x256xf32, #tpu.memory_space<vmem>>, vector<1x1x256xf32>
    %14 = vector.shape_cast %13 : vector<1x1x256xf32> to vector<1x256xf32>
    %15 = vector.broadcast %14 : vector<1x256xf32> to vector<8x256xf32>
    %16 = arith.mulf %12, %15 : vector<8x256xf32>
    %c1_i32 = arith.constant 1 : i32
    %17 = tpu.dynamic_rotate %1 by %c1_i32 dim 1 : vector<8x256xf32>, i32 -> vector<8x256xf32>
    %c3 = arith.constant 3 : index
    %c0_9 = arith.constant 0 : index
    %c0_10 = arith.constant 0 : index
    %18 = vector.load %arg4[%c3, %c0_9, %c0_10] : memref<9x1x256xf32, #tpu.memory_space<vmem>>, vector<1x1x256xf32>
    %19 = vector.shape_cast %18 : vector<1x1x256xf32> to vector<1x256xf32>
    %20 = vector.broadcast %19 : vector<1x256xf32> to vector<8x256xf32>
    %21 = arith.mulf %17, %20 : vector<8x256xf32>
    %c255_i32 = arith.constant 255 : i32
    %22 = tpu.dynamic_rotate %1 by %c255_i32 dim 1 : vector<8x256xf32>, i32 -> vector<8x256xf32>
    %c5 = arith.constant 5 : index
    %c0_11 = arith.constant 0 : index
    %c0_12 = arith.constant 0 : index
    %23 = vector.load %arg4[%c5, %c0_11, %c0_12] : memref<9x1x256xf32, #tpu.memory_space<vmem>>, vector<1x1x256xf32>
    %24 = vector.shape_cast %23 : vector<1x1x256xf32> to vector<1x256xf32>
    %25 = vector.broadcast %24 : vector<1x256xf32> to vector<8x256xf32>
    %26 = arith.mulf %22, %25 : vector<8x256xf32>
    %c241_i32 = arith.constant 241 : i32
    %27 = tpu.dynamic_rotate %1 by %c241_i32 dim 1 : vector<8x256xf32>, i32 -> vector<8x256xf32>
    %c6 = arith.constant 6 : index
    %c0_13 = arith.constant 0 : index
    %c0_14 = arith.constant 0 : index
    %28 = vector.load %arg4[%c6, %c0_13, %c0_14] : memref<9x1x256xf32, #tpu.memory_space<vmem>>, vector<1x1x256xf32>
    %29 = vector.shape_cast %28 : vector<1x1x256xf32> to vector<1x256xf32>
    %30 = vector.broadcast %29 : vector<1x256xf32> to vector<8x256xf32>
    %31 = arith.mulf %27, %30 : vector<8x256xf32>
    %c240_i32 = arith.constant 240 : i32
    %32 = tpu.dynamic_rotate %1 by %c240_i32 dim 1 : vector<8x256xf32>, i32 -> vector<8x256xf32>
    %c7 = arith.constant 7 : index
    %c0_15 = arith.constant 0 : index
    %c0_16 = arith.constant 0 : index
    %33 = vector.load %arg4[%c7, %c0_15, %c0_16] : memref<9x1x256xf32, #tpu.memory_space<vmem>>, vector<1x1x256xf32>
    %34 = vector.shape_cast %33 : vector<1x1x256xf32> to vector<1x256xf32>
    %35 = vector.broadcast %34 : vector<1x256xf32> to vector<8x256xf32>
    %36 = arith.mulf %32, %35 : vector<8x256xf32>
    %c239_i32 = arith.constant 239 : i32
    %37 = tpu.dynamic_rotate %1 by %c239_i32 dim 1 : vector<8x256xf32>, i32 -> vector<8x256xf32>
    %c8 = arith.constant 8 : index
    %c0_17 = arith.constant 0 : index
    %c0_18 = arith.constant 0 : index
    %38 = vector.load %arg4[%c8, %c0_17, %c0_18] : memref<9x1x256xf32, #tpu.memory_space<vmem>>, vector<1x1x256xf32>
    %39 = vector.shape_cast %38 : vector<1x1x256xf32> to vector<1x256xf32>
    %40 = vector.broadcast %39 : vector<1x256xf32> to vector<8x256xf32>
    %41 = arith.mulf %37, %40 : vector<8x256xf32>
    %42 = tpu.concatenate %6, %11, %16, %21, %1, %26, %31, %36, %41 in 0 : vector<8x256xf32>, vector<8x256xf32>, vector<8x256xf32>, vector<8x256xf32>, vector<8x256xf32>, vector<8x256xf32>, vector<8x256xf32>, vector<8x256xf32>, vector<8x256xf32> -> vector<72x256xf32>
    %c0_19 = arith.constant 0 : index
    %c0_20 = arith.constant 0 : index
    %43 = vector.load %arg2[%c0_19, %c0_20] : memref<8x72xf32, #tpu.memory_space<vmem>>, vector<8x72xf32>
    %cst = arith.constant dense<0.000000e+00> : vector<8x256xf32>
    %44 = tpu.matmul %43, %42, %cst {dimension_numbers = #tpu.dot_dimension_numbers<[1], [0], [0], [1], [0, 0, 1, 1], [], []>} : vector<8x72xf32>, vector<72x256xf32>, vector<8x256xf32> -> vector<8x256xf32>
    %c0_21 = arith.constant 0 : index
    %c0_22 = arith.constant 0 : index
    %45 = vector.load %arg3[%c0_21, %c0_22] : memref<8x1xf32, #tpu.memory_space<vmem>>, vector<8x1xf32>
    %46 = vector.broadcast %45 : vector<8x1xf32> to vector<8x256xf32>
    %47 = arith.addf %44, %46 : vector<8x256xf32>
    %cst_23 = arith.constant dense<0.000000e+00> : vector<8xf32>
    %48 = vector.multi_reduction <add>, %47, %cst_23 [1] : vector<8x256xf32> to vector<8xf32>
    %49 = vector.shape_cast %48 : vector<8xf32> to vector<8x1xf32>
    %cst_24 = arith.constant 2.560000e+02 : f32
    %50 = vector.broadcast %cst_24 : f32 to vector<8x1xf32>
    %51 = arith.divf %49, %50 : vector<8x1xf32>
    %52 = vector.broadcast %51 : vector<8x1xf32> to vector<8x256xf32>
    %53 = arith.subf %47, %52 : vector<8x256xf32>
    %54 = arith.mulf %53, %53 : vector<8x256xf32>
    %cst_25 = arith.constant dense<0.000000e+00> : vector<8xf32>
    %55 = vector.multi_reduction <add>, %54, %cst_25 [1] : vector<8x256xf32> to vector<8xf32>
    %56 = vector.shape_cast %55 : vector<8xf32> to vector<8x1xf32>
    %cst_26 = arith.constant 2.560000e+02 : f32
    %57 = vector.broadcast %cst_26 : f32 to vector<8x1xf32>
    %58 = arith.divf %56, %57 : vector<8x1xf32>
    %59 = vector.broadcast %51 : vector<8x1xf32> to vector<8x256xf32>
    %60 = arith.subf %47, %59 : vector<8x256xf32>
    %cst_27 = arith.constant 9.99999974E-6 : f32
    %61 = vector.broadcast %cst_27 : f32 to vector<8x1xf32>
    %62 = arith.addf %58, %61 : vector<8x1xf32>
    %63 = math.rsqrt %62 : vector<8x1xf32>
    %64 = vector.broadcast %63 : vector<8x1xf32> to vector<8x256xf32>
    %65 = arith.mulf %60, %64 : vector<8x256xf32>
    %cst_28 = arith.constant 0.000000e+00 : f32
    %66 = vector.broadcast %cst_28 : f32 to vector<8x256xf32>
    %67 = arith.maximumf %65, %66 : vector<8x256xf32>
    %c0_29 = arith.constant 0 : index
    %c0_30 = arith.constant 0 : index
    %c0_31 = arith.constant 0 : index
    %68 = vector.load %arg5[%c0_29, %c0_30, %c0_31] : memref<1x8x256xf32, #tpu.memory_space<vmem>>, vector<1x8x256xf32>
    %69 = vector.shape_cast %68 : vector<1x8x256xf32> to vector<8x256xf32>
    %70 = vector.shape_cast %67 : vector<8x256xf32> to vector<1x8x256xf32>
    tpu.vector_store %arg5[%c0_29, %c0_30, %c0_31], %70 {strides = array<i32>} : memref<1x8x256xf32, #tpu.memory_space<vmem>>, vector<1x8x256xf32>,
    return
  }
  func.func @transform_0(%arg0: i32) -> (i32, i32, i32) {
    %c0_i32 = arith.constant 0 : i32
    %c0_i32_0 = arith.constant 0 : i32
    %c0_i32_1 = arith.constant 0 : i32
    return %arg0, %c0_i32, %c0_i32_0 : i32, i32, i32
  }
  func.func @transform_1(%arg0: i32) -> (i32, i32) {
    %c0_i32 = arith.constant 0 : i32
    %c0_i32_0 = arith.constant 0 : i32
    %c0_i32_1 = arith.constant 0 : i32
    return %c0_i32, %c0_i32_0 : i32, i32
  }
  func.func @transform_2(%arg0: i32) -> (i32, i32) {
    %c0_i32 = arith.constant 0 : i32
    %c0_i32_0 = arith.constant 0 : i32
    %c0_i32_1 = arith.constant 0 : i32
    return %c0_i32, %c0_i32_0 : i32, i32
  }
  func.func @transform_3(%arg0: i32) -> (i32, i32, i32) {
    %c0_i32 = arith.constant 0 : i32
    %c0_i32_0 = arith.constant 0 : i32
    %c0_i32_1 = arith.constant 0 : i32
    %c0_i32_2 = arith.constant 0 : i32
    return %c0_i32, %c0_i32_0, %c0_i32_1 : i32, i32, i32
  }
  func.func @transform_4(%arg0: i32) -> (i32, i32, i32) {
    %c0_i32 = arith.constant 0 : i32
    %c0_i32_0 = arith.constant 0 : i32
    %c0_i32_1 = arith.constant 0 : i32
    return %arg0, %c0_i32, %c0_i32_0 : i32, i32, i32
  }
}

</mosaic_0001>

<bundles_post_ra>
// kernel: contour.1
= control target key start
LH: loop header
LB: loop body
LE: loop exit
PB: predicated region body
PF: predicated region fallthrough
CT: control target
= control target key end

     0   :  { %s560_s15 = smov 0   ;;  %s650_s0 = inlined_call_operand.vmem [shape: f32[2,8,256], index: 0, kind: input, shape index: {}]   ;;  %s651_s1 = inlined_call_operand.vmem [shape: f32[8,72], index: 1, kind: input, shape index: {}]   ;;  %s652_s2 = inlined_call_operand.vmem [shape: f32[8,1], index: 2, kind: input, shape index: {}]   ;;  %s653_s3 = inlined_call_operand.vmem [shape: f32[9,1,256], index: 3, kind: input, shape index: {}]   ;;  %s654_s4 = inlined_call_operand.vmem [shape: f32[2,8,256], index: 4, kind: output, shape index: {}]  }
   0x1 LB: > { %s471_s16 = sadd.s32 4294967295, %s523_s15   ;;  %p475_p0 = scmp.ge.s32.totalorder %s523_s15, 1  ;;  %s523_s15 = sphi %s560_s15, %s14_s15  }
   0x2   : > { %p162_p1 = scmp.lt.s32.totalorder %s523_s15, 3 }
   0x4   : > { %p163_p2 = pnand %p475_p0, %p162_p1 }
   0x5   : > { %p188_p3 = scmp.lt.s32.totalorder (!%p163_p2), %s471_s16, 1  ;;  %s525_s21 = smov (!%p163_p2), 112  }
   0x6   : > { %166 = sbr.rel (%p163_p2) target bundleno = 572 (0x23c), region = 36  ;;  %s526_s22 = smov (!%p163_p2), 111  }
   0x7   : > { %s527_s23 = smov (!%p163_p2), 113   ;;  %s528_s24 = smov (!%p163_p2), 127  }
   0x8   : > { %s529_s25 = smov (!%p163_p2), 1   ;;  %s530_s26 = smov (!%p163_p2), 15  }
   0x9   : > { %s531_s27 = smov (!%p163_p2), 16   ;;  %s532_s28 = smov (!%p163_p2), 17  }
   0xb   : > { %s656_s16 = smov (!%p188_p3, %s471_s16), 1  ;;  %v204_v3 = vlaneseq  ;;  %v486_v7 = vld [vmem:[%s653_s3 + $0x10] sm:$0x3]  ;;  %v485_v9 = vld [vmem:[%s653_s3 + $0xe] sm:$0x3]  ;;  %v330_v35 = vld [vmem:[%s652_s2] sm:$0xff] }
   0xc   : > { %s491_s17 = sshll.u32 %s656_s16, 4  ;;  %v323_v10 = vperm.slane %v486_v7, 0  ;;  %v324_v11 = vperm.slane %v486_v7, 1  ;;  %v484_v12 = vld [vmem:[%s653_s3 + $0xc] sm:$0x3]  ;;  %v307_v15 = vperm.slane %v485_v9, 0 }
   0xd   : > { %s192_s20 = scalar_lea.vmem %s650_s0, %s491_s17  ;;  %v596_v6 = vand.u32 127, %v204_v3  ;;  %v308_v16 = vperm.slane %v485_v9, 1  ;;  %v291_v23 = vperm.slane %v484_v12, 0  ;;  %v292_v24 = vperm.slane %v484_v12, 1  ;;  %v483_v27 = vld [vmem:[%s653_s3 + $0xa] sm:$0x3] }
   0xe   : > { %v576_v0 = vld [vmem:[%s192_s20] sm:$0xff]  ;;  %v581_v1 = vld [vmem:[%s192_s20 + $0x8] sm:$0xff]  ;;  %v275_v33 = vperm.slane %v483_v27, 0  ;;  %v276_v34 = vperm.slane %v483_v27, 1  ;;  %v533_v36 = vmov 0   ;;  %vm336_vm8 = vcmask 588800  }
   0xf   : > { %297 = vrot.lane.b32.xlu1 %v576_v0, %s525_s21  ;;  %313 = vrot.lane.b32.xlu0 %v576_v0, %s526_s22  ;;  %vm301_vm0 = vcmp.lt.s32.totalorder %v596_v6, 112  ;;  %vm317_vm1 = vcmp.lt.s32.totalorder %v596_v6, 111  ;;  %vm285_vm2 = vcmp.lt.s32.totalorder %v596_v6, 113  ;;  %vm269_vm3 = vcmp.lt.s32.totalorder %v596_v6, 127  ;;  %v482_v43 = vld [vmem:[%s653_s3 + $0x6] sm:$0x3] }
  0x10   : > { %281 = vrot.lane.b32.xlu2 %v576_v0, %s527_s23  ;;  %511 = vset.pattern.permute.xlu1 %v533_v36  ;;  %v481_v44 = vld [vmem:[%s653_s3 + $0x4] sm:$0x3]  ;;  %vm253_vm4 = vcmp.lt.s32.totalorder %v596_v6, 1  ;;  %v259_v45 = vperm.slane %v482_v43, 0  ;;  %v260_v46 = vperm.slane %v482_v43, 1  ;;  %vm237_vm5 = vcmp.lt.s32.totalorder %v596_v6, 15 }
  0x11   : > { %512 = vset.pattern.permute.xlu0 %v533_v36  ;;  %v243_v48 = vperm.slane %v481_v44, 0  ;;  %v244_v49 = vperm.slane %v481_v44, 1  ;;  %v480_v60 = vld [vmem:[%s653_s3 + $0x2] sm:$0x3]  ;;  %vm221_vm6 = vcmp.lt.s32.totalorder %v596_v6, 16  ;;  %vm206_vm7 = vcmp.lt.s32.totalorder %v596_v6, 17 }
  0x12   : > { %v227_v61 = vperm.slane %v480_v60, 0  ;;  %v228_v62 = vperm.slane %v480_v60, 1 }
  0x17   : > { %299 = vrot.lane.b32.xlu1 %v581_v1, %s525_s21  ;;  %315 = vrot.lane.b32.xlu0 %v581_v1, %s526_s22 }
  0x18   : > { %283 = vrot.lane.b32.xlu2 %v581_v1, %s527_s23 }
  0x1f   : > { %267 = vrot.lane.b32.xlu1 %v581_v1, %s528_s24  ;;  %265 = vrot.lane.b32.xlu0 %v576_v0, %s528_s24 }
  0x20   : > { %249 = vrot.lane.b32.xlu2 %v576_v0, %s529_s25 }
  0x27   : > { %233 = vrot.lane.b32.xlu1 %v576_v0, %s530_s26  ;;  %251 = vrot.lane.b32.xlu0 %v581_v1, %s529_s25 }
  0x28   : > { %235 = vrot.lane.b32.xlu2 %v581_v1, %s530_s26 }
  0x2f   : > { %219 = vrot.lane.b32.xlu1 %v581_v1, %s531_s27  ;;  %217 = vrot.lane.b32.xlu0 %v576_v0, %s531_s27 }
  0x30   : > { %200 = vrot.lane.b32.xlu2 %v576_v0, %s532_s28 }
  0x37   : > { %202 = vrot.lane.b32.xlu0 %v581_v1, %s532_s28  ;;  %333 = vperm.xlu1 %511, %v330_v35   ;;  %s197_s28 = scalar_lea.vmem %s654_s4, %s491_s17 }
  0x6a   : > { %v282_v2 = vpop.permute.xlu2 %281 }
  0x72   : > { %v284_v8 = vpop.permute.xlu2 %283 }
  0x73   : > { %v286_v25 = vsel %vm285_vm2, %v282_v2, %v284_v8  ;;  %v287_v26 = vsel %vm285_vm2, %v284_v8, %v282_v2 }
  0x74   : > { %v295_v31 = vmul.f32 %v291_v23, %v286_v25  ;;  %v296_v32 = vmul.f32 %v292_v24, %v287_v26 }
  0x7a   : > { %v250_v30 = vpop.permute.xlu2 %249 }
  0x81   : > { %v298_v4 = vpop.permute.xlu1 %297  ;;  %v314_v5 = vpop.permute.xlu0 %313 }
  0x82   : > { %v236_v47 = vpop.permute.xlu2 %235 }
  0x89   : > { %v300_v13 = vpop.permute.xlu1 %299  ;;  %v316_v14 = vpop.permute.xlu0 %315 }
  0x8a   : > { %v302_v17 = vsel %vm301_vm0, %v298_v4, %v300_v13  ;;  %v303_v18 = vsel %vm301_vm0, %v300_v13, %v298_v4  ;;  %v318_v19 = vsel %vm317_vm1, %v314_v5, %v316_v14  ;;  %v319_v20 = vsel %vm317_vm1, %v316_v14, %v314_v5  ;;  %v209_v5 = vld [vmem:[%s653_s3] sm:$0x3]  ;;  %v201_v7 = vpop.permute.xlu2 %200 }
  0x8b   : > { %v327_v21 = vmul.f32 %v323_v10, %v318_v19  ;;  %v328_v22 = vmul.f32 %v324_v11, %v319_v20  ;;  %v311_v28 = vmul.f32 %v307_v15, %v302_v17  ;;  %v312_v29 = vmul.f32 %v308_v16, %v303_v18  ;;  %v329_v15 = vld [vmem:[%s651_s1] sm:$0xff] }
  0x8c   : > { %v211_v8 = vperm.slane %v209_v5, 0  ;;  %v212_v9 = vperm.slane %v209_v5, 1 }
  0x8d   : > { %347 = vmatpush.msra.mxu0 %v327_v21  ;;  %367 = vmatpush.msra.mxu1 %v328_v22  ;;  %v534_v21 = vmov 256.0  }
  0x8e   : > { %513 = vrcp.f32 %v534_v21 }
  0x8f   : > { %348 = vmatpush.msra.mxu0 %v311_v28  ;;  %368 = vmatpush.msra.mxu1 %v312_v29 }
  0x91   : > { %v268_v37 = vpop.permute.xlu1 %267  ;;  %349 = vmatpush.msra.mxu0 %v295_v31  ;;  %369 = vmatpush.msra.mxu1 %v296_v32  ;;  %v266_v38 = vpop.permute.xlu0 %265 }
  0x92   : > { %v270_v39 = vsel %vm269_vm3, %v266_v38, %v268_v37  ;;  %v271_v40 = vsel %vm269_vm3, %v268_v37, %v266_v38 }
  0x93   : > { %v279_v41 = vmul.f32 %v275_v33, %v270_v39  ;;  %v280_v42 = vmul.f32 %v276_v34, %v271_v40 }
  0x94   : > { %v514_v22 = vpop.eup %513 }
  0x95   : > { %350 = vmatpush.msra.mxu0 %v279_v41  ;;  %370 = vmatpush.msra.mxu1 %v280_v42  ;;  %v384_v23 = vmul.f32 256.0, %v514_v22  ;;  %vm388_vm9 = vweird.f32 %v514_v22 }
  0x97   : > { %351 = vmatpush.msra.mxu0 %v576_v0  ;;  %371 = vmatpush.msra.mxu1 %v581_v1  ;;  %v385_v24 = vsub.f32 1.0, %v384_v23 }
  0x99   : > { %v234_v50 = vpop.permute.xlu1 %233  ;;  %v252_v51 = vpop.permute.xlu0 %251  ;;  %v386_v25 = vmul.f32 %v514_v22, %v385_v24 }
  0x9a   : > { %v254_v52 = vsel %vm253_vm4, %v250_v30, %v252_v51  ;;  %v255_v53 = vsel %vm253_vm4, %v252_v51, %v250_v30  ;;  %v238_v54 = vsel %vm237_vm5, %v234_v50, %v236_v47  ;;  %v239_v55 = vsel %vm237_vm5, %v236_v47, %v234_v50 }
  0x9b   : > { %v263_v56 = vmul.f32 %v259_v45, %v255_v53  ;;  %v264_v57 = vmul.f32 %v260_v46, %v254_v52  ;;  %v247_v58 = vmul.f32 %v243_v48, %v239_v55  ;;  %v248_v59 = vmul.f32 %v244_v49, %v238_v54 }
  0x9c   : > { %v387_v26 = vadd.f32 %v514_v22, %v386_v25 }
  0x9d   : > { %352 = vmatpush.msra.mxu0 %v263_v56  ;;  %372 = vmatpush.msra.mxu1 %v264_v57 }
  0x9e   : > { %v389_v27 = vsel %vm388_vm9, %v514_v22, %v387_v26 }
  0x9f   : > { %353 = vmatpush.msra.mxu0 %v247_v58  ;;  %373 = vmatpush.msra.mxu1 %v248_v59 }
  0xa1   : > { %v220_v63 = vpop.permute.xlu1 %219  ;;  %v218_v0 = vpop.permute.xlu0 %217 }
  0xa2   : > { %v222_v1 = vsel %vm221_vm6, %v218_v0, %v220_v63  ;;  %v223_v2 = vsel %vm221_vm6, %v220_v63, %v218_v0 }
  0xa3   : > { %v231_v3 = vmul.f32 %v227_v61, %v223_v2  ;;  %v232_v4 = vmul.f32 %v228_v62, %v222_v1 }
  0xa5   : > { %354 = vmatpush.msra.mxu0 %v231_v3  ;;  %374 = vmatpush.msra.mxu1 %v232_v4 }
  0xa9   : > { %v203_v10 = vpop.permute.xlu0 %202  ;;  %v334_v16 = vpop.permute.xlu1 %333 }
  0xaa   : > { %v207_v11 = vsel %vm206_vm7, %v201_v7, %v203_v10  ;;  %v208_v12 = vsel %vm206_vm7, %v203_v10, %v201_v7 }
  0xab   : > { %v215_v13 = vmul.f32 %v211_v8, %v208_v12  ;;  %v216_v14 = vmul.f32 %v212_v9, %v207_v11 }
  0xad   : > { %355 = vmatpush.msra.mxu0 %v215_v13  ;;  %375 = vmatpush.msra.mxu1 %v216_v14 }
  0xae   : > { %487 = vmatmul.msk.f32.vlgmr.msra.gmra.mxu0 %vm336_vm8, %v329_v15  ;;  %488 = vmatmul.msk.f32.vlgmr.msra.gmra.mxu1 %vm336_vm8, %v329_v15 }
 0x12b   : > { %v357_v17 = vpop.f32.mrf.mxu0  ;;  %v377_v18 = vpop.f32.mrf.mxu1 }
 0x12c   : > { %v358_v6 = vadd.f32 %v357_v17, %v334_v16  ;;  %v378_v19 = vadd.f32 %v377_v18, %v334_v16 }
 0x12e   : > { %v380_v20 = vadd.f32 %v378_v19, %v358_v6 }
 0x130   : > { %381 = vadd.xlane.f32.xlu2 %v380_v20 }
 0x1a3   : > { %v382_v28 = vpop.xlane.xlu2 %381 }
 0x1a4   : > { %v390_v29 = vmul.f32 %v389_v27, %v382_v28 }
 0x1a6   : > { %v391_v30 = vsub.f32 %v358_v6, %v390_v29  ;;  %v392_v31 = vsub.f32 %v378_v19, %v390_v29 }
 0x1a8   : > { %v393_v32 = vmul.f32 %v391_v30, %v391_v30  ;;  %v394_v33 = vmul.f32 %v392_v31, %v392_v31 }
 0x1aa   : > { %v395_v34 = vadd.f32 %v394_v33, %v393_v32 }
 0x1ac   : > { %396 = vadd.xlane.f32.xlu0 %v395_v34 }
 0x21f   : > { %v397_v35 = vpop.xlane.xlu0 %396 }
 0x220   : > { %v398_v36 = vmul.f32 %v397_v35, %v389_v27 }
 0x222   : > { %v399_v37 = vadd.f32 1e-05, %v398_v36 }
 0x224   : > { %515 = vrsqrt.f32 %v399_v37  ;;  %vm406_vm11 = vweird.f32 %v399_v37 }
 0x22a   : > { %v516_v38 = vpop.eup %515 }
 0x22b   : > { %v401_v39 = vmul.f32 %v516_v38, %v399_v37  ;;  %vm407_vm10 = vweird.f32 %v516_v38 }
 0x22c   : > { %vm408_vm12 = vmor %vm406_vm11, %vm407_vm10 }
 0x22d   : > { %v402_v40 = vmul.f32 %v516_v38, %v401_v39 }
 0x22f   : > { %v403_v41 = vmul.f32 0.5, %v402_v40 }
 0x231   : > { %v404_v42 = vsub.f32 1.5, %v403_v41 }
 0x233   : > { %v405_v43 = vmul.f32 %v516_v38, %v404_v42 }
 0x235   : > { %v409_v44 = vsel %vm408_vm12, %v516_v38, %v405_v43 }
 0x236   : > { %v410_v45 = vmul.f32 %v409_v44, %v391_v30  ;;  %v411_v46 = vmul.f32 %v409_v44, %v392_v31 }
 0x238   : > { %v412_v47 = vmax.f32 %v410_v45, 0.0  ;;  %v413_v48 = vmax.f32 %v411_v46, 0.0 }
 0x23a   : > { %414 = vst [vmem:[%s197_s28] sm:$0xff] %v412_v47 }
 0x23b   : > { %415 = vst [vmem:[%s197_s28 + $0x8] sm:$0xff] %v413_v48 }
 0x23c PF: > { %s14_s15 = sadd.s32 1, %s523_s15  }
 0x23d   : > { %p11_p4 = scmp.ge.s32.totalorder %s14_s15, 4  }
 0x23f   :  { %13 = sbr.rel (!%p11_p4) target bundleno = 1 (0x1), region = 73 }

</bundles_post_ra>
